<compile_context>
chip_gen: v7x
topology: tpu7x:2x2x1
jax: 0.10.0
libtpu: 0.0.40
codegen_flags: <defaults>
</compile_context>

<pallas_src>
import jax
import jax.numpy as jnp
from jax.experimental import pallas as pl
from jax.experimental.pallas import tpu as pltpu


def _round_up(x, m):
    return (x + m - 1) // m * m


def masklm_mlp_kernel(x_ref, w1_ref, b1_ref, gamma_ref, beta_ref,
                      w2_ref, b2_ref, o_ref, h_ref):
    # x_ref:      (tm, d_model)   bf16
    # w1_ref:     (d_model, d_ff) bf16     b1/gamma/beta: (1, d_ff) f32
    # w2_ref:     (d_ff, tn)      bf16     b2_ref:        (1, tn)  f32
    # o_ref:      (tm, tn)        f32
    # h_ref:      (tm, d_ff)      bf16  scratch, persists across vocab tiles

    # Hidden activation is identical for every vocab tile: compute it only on
    # the first vocab step of each M tile and cache it in VMEM scratch.
    @pl.when(pl.program_id(1) == 0)
    def _compute_hidden():
        h = jnp.dot(x_ref[...], w1_ref[...],
                    preferred_element_type=jnp.float32)
        h = h + b1_ref[...]
        h = jnp.maximum(h, 0.0)

        # LayerNorm (eps = 1e-5, matches nn.LayerNorm), single reduction pass:
        # mean = sum/d, var = E[x^2] - mean^2, all in f32.
        d_ff = h.shape[-1]
        inv_d = 1.0 / float(d_ff)
        s1 = jnp.sum(h, axis=-1, keepdims=True)
        s2 = jnp.sum(h * h, axis=-1, keepdims=True)
        mean = s1 * inv_d
        var = s2 * inv_d - mean * mean
        h = (h - mean) * jax.lax.rsqrt(var + 1e-5)
        h = h * gamma_ref[...] + beta_ref[...]
        h_ref[...] = h.astype(h_ref.dtype)

    # Vocab projection for this (i, j) tile: bf16 MXU matmul, f32 accumulate.
    y = jnp.dot(h_ref[...], w2_ref[...], preferred_element_type=jnp.float32)
    o_ref[...] = (y + b2_ref[...]).astype(o_ref.dtype)


def masklm_forward(X, pred_positions, params, *, tm=None, tn=None):
    """Replicates MaskLM.forward.

    X:              (batch, seq_len, d_model) float32
    pred_positions: (batch, num_pred) int32
    returns:        (batch, num_pred, vocab_size) float32
    """
    w1, b1, gamma, beta, w2, b2 = (
        params["w1"], params["b1"], params["gamma"],
        params["beta"], params["w2"], params["b2"],
    )
    batch, _, d_model = X.shape
    num_pred = pred_positions.shape[1]
    d_ff = w1.shape[1]
    vocab = w2.shape[1]
    M = batch * num_pred

    # --- gather glue (matches torch advanced indexing X[batch_idx, pos]) ---
    flat_pos = pred_positions.reshape(-1)                                  # (B*P,)
    batch_idx = jnp.repeat(jnp.arange(batch, dtype=jnp.int32), num_pred)   # (B*P,)
    masked_X = X[batch_idx, flat_pos]                                      # (B*P, d_model)

    # --- tile sizes & padding -------------------------------------------
    if tm is None:
        tm = min(256, _round_up(M, 16))        # rows per tile (bf16-friendly)
    if tn is None:
        tn = min(1024, _round_up(vocab, 128))  # lane-dense vocab tile
    M_pad = _round_up(M, tm)
    V_pad = _round_up(vocab, tn)

    x_p = jnp.pad(masked_X, ((0, M_pad - M), (0, 0))).astype(jnp.bfloat16)
    w1_b = w1.astype(jnp.bfloat16)
    w2_p = jnp.pad(w2, ((0, 0), (0, V_pad - vocab))).astype(jnp.bfloat16)
    b2_p = jnp.pad(b2, ((0, 0), (0, V_pad - vocab))).astype(jnp.float32)
    b1_f = b1.astype(jnp.float32)
    gamma_f = gamma.astype(jnp.float32)
    beta_f = beta.astype(jnp.float32)

    grid = (M_pad // tm, V_pad // tn)

    grid_spec = pltpu.PrefetchScalarGridSpec(
        num_scalar_prefetch=0,
        grid=grid,
        in_specs=[
            pl.BlockSpec((tm, d_model), lambda i, j: (i, 0)),   # x tile
            pl.BlockSpec((d_model, d_ff), lambda i, j: (0, 0)),  # w1 (small, full)
            pl.BlockSpec((1, d_ff), lambda i, j: (0, 0)),        # b1
            pl.BlockSpec((1, d_ff), lambda i, j: (0, 0)),        # gamma
            pl.BlockSpec((1, d_ff), lambda i, j: (0, 0)),        # beta
            # Streamed vocab tiles of w2 / b2.  (For v5e's lower HBM BW, a
            # deeper pipeline via pipeline_mode=pl.Buffered(3) can help.)
            pl.BlockSpec((d_ff, tn), lambda i, j: (0, j)),
            pl.BlockSpec((1, tn), lambda i, j: (0, j)),
        ],
        out_specs=pl.BlockSpec((tm, tn), lambda i, j: (i, j)),
        scratch_shapes=[pltpu.VMEM((tm, d_ff), jnp.bfloat16)],   # cached hidden
    )

    out = pl.pallas_call(
        masklm_mlp_kernel,
        out_shape=jax.ShapeDtypeStruct((M_pad, V_pad), jnp.float32),
        grid_spec=grid_spec,
        compiler_params=pltpu.CompilerParams(
            dimension_semantics=("parallel", "arbitrary"),
            vmem_limit_bytes=48 << 20,
        ),
    )(x_p, w1_b, b1_f, gamma_f, beta_f, w2_p, b2_p)

    return out[:M, :vocab].reshape(batch, num_pred, vocab)


def init_params(key, d_model, d_ff, vocab_size):
    """Deterministic init mirroring nn.Linear/nn.LayerNorm parameter shapes."""
    k1, k2, k3, k4 = jax.random.split(key, 4)
    lim1 = 1.0 / (d_model ** 0.5)
    lim2 = 1.0 / (d_ff ** 0.5)
    return {
        "w1": jax.random.uniform(k1, (d_model, d_ff), jnp.float32, -lim1, lim1),
        "b1": jax.random.uniform(k2, (1, d_ff), jnp.float32, -lim1, lim1),
        "gamma": jnp.ones((1, d_ff), jnp.float32),
        "beta": jnp.zeros((1, d_ff), jnp.float32),
        "w2": jax.random.uniform(k3, (d_ff, vocab_size), jnp.float32, -lim2, lim2),
        "b2": jax.random.uniform(k4, (1, vocab_size), jnp.float32, -lim2, lim2),
    }


if __name__ == "__main__":
    # Small shapes consistent with the module: d_ff = 4 * d_model.
    batch, seq_len, d_model = 2, 8, 32
    d_ff = 4 * d_model        # 128
    vocab_size = 64
    num_pred = 4

    key = jax.random.PRNGKey(0)
    kx, kp, kparam = jax.random.split(key, 3)

    X = jax.random.normal(kx, (batch, seq_len, d_model), jnp.float32)
    pred_positions = jax.random.randint(kp, (batch, num_pred), 0, seq_len,
                                        dtype=jnp.int32)
    params = init_params(kparam, d_model, d_ff, vocab_size)

    y = masklm_forward(X, pred_positions, params)
    jax.block_until_ready(y)
    assert y.shape == (batch, num_pred, vocab_size)

    # Reference 1: mirrors the kernel's bf16 matmul / f32-stat path (tight check).
    def ref_bf16(X, pred_positions, p):
        b, np_ = X.shape[0], pred_positions.shape[1]
        bidx = jnp.repeat(jnp.arange(b), np_)
        mx = X[bidx, pred_positions.reshape(-1)].astype(jnp.bfloat16)
        h = jnp.dot(mx, p["w1"].astype(jnp.bfloat16),
                    preferred_element_type=jnp.float32) + p["b1"]
        h = jnp.maximum(h, 0.0)
        mu = h.mean(-1, keepdims=True)
        var = ((h - mu) ** 2).mean(-1, keepdims=True)
        h = ((h - mu) * jax.lax.rsqrt(var + 1e-5) * p["gamma"]
             + p["beta"]).astype(jnp.bfloat16)
        y = jnp.dot(h, p["w2"].astype(jnp.bfloat16),
                    preferred_element_type=jnp.float32) + p["b2"]
        return y.reshape(b, np_, -1)

    # Reference 2: pure f32 module semantics (loose sanity check).
    def ref_f32(X, pred_positions, p):
        b, np_ = X.shape[0], pred_positions.shape[1]
        bidx = jnp.repeat(jnp.arange(b), np_)
        mx = X[bidx, pred_positions.reshape(-1)]
        h = jnp.maximum(mx @ p["w1"] + p["b1"], 0.0)
        mu = h.mean(-1, keepdims=True)
        var = ((h - mu) ** 2).mean(-1, keepdims=True)
        h = (h - mu) / jnp.sqrt(var + 1e-5) * p["gamma"] + p["beta"]
        return (h @ p["w2"] + p["b2"]).reshape(b, np_, -1)

    y_bf = ref_bf16(X, pred_positions, params)
    y_f32 = ref_f32(X, pred_positions, params)
    assert jnp.allclose(y, y_bf, atol=2e-2, rtol=2e-2), "mismatch vs bf16 reference"
    assert jnp.allclose(y, y_f32, atol=1e-1, rtol=1e-1), "mismatch vs f32 reference"

    print("KERNEL_OK")
</pallas_src>

<mosaic_0001>
module attributes {stable_mosaic.version = 11 : i64} {
  func.func @masklm_mlp_kernel(%arg0: i32, %arg1: i32, %arg2: memref<16x32xbf16, #tpu.memory_space<vmem>>, %arg3: memref<32x128xbf16, #tpu.memory_space<vmem>>, %arg4: memref<1x128xf32, #tpu.memory_space<vmem>>, %arg5: memref<1x128xf32, #tpu.memory_space<vmem>>, %arg6: memref<1x128xf32, #tpu.memory_space<vmem>>, %arg7: memref<128x128xbf16, #tpu.memory_space<vmem>>, %arg8: memref<1x128xf32, #tpu.memory_space<vmem>>, %arg9: memref<16x128xf32, #tpu.memory_space<vmem>>, %arg10: memref<16x128xbf16, #tpu.memory_space<vmem>>) attributes {dimension_semantics = [#tpu.dimension_semantics<parallel>, #tpu.dimension_semantics<arbitrary>], iteration_bounds = array<i64: 1, 1>, scalar_prefetch = 0 : i64, scratch_operands = 1 : i64, tpu.core_type = #tpu.core_type<tc>, window_params = [{transform_indices = @transform_0, window_bounds = array<i64: 16, 32>}, {pipeline_mode = #tpu.pipeline_mode<synchronous>, transform_indices = @transform_1, window_bounds = array<i64: 32, 128>}, {pipeline_mode = #tpu.pipeline_mode<synchronous>, transform_indices = @transform_2, window_bounds = array<i64: 1, 128>}, {pipeline_mode = #tpu.pipeline_mode<synchronous>, transform_indices = @transform_3, window_bounds = array<i64: 1, 128>}, {pipeline_mode = #tpu.pipeline_mode<synchronous>, transform_indices = @transform_4, window_bounds = array<i64: 1, 128>}, {transform_indices = @transform_5, window_bounds = array<i64: 128, 128>}, {transform_indices = @transform_6, window_bounds = array<i64: 1, 128>}, {transform_indices = @transform_7, window_bounds = array<i64: 16, 128>}]} {
    %c0_i32 = arith.constant 0 : i32
    %0 = arith.cmpi eq, %arg1, %c0_i32 : i32
    %1 = arith.extui %0 : i1 to i32
    %c0_i32_0 = arith.constant 0 : i32
    %2 = arith.cmpi ne, %1, %c0_i32_0 : i32
    scf.if %2 {
      %c0_8 = arith.constant 0 : index
      %c0_9 = arith.constant 0 : index
      %10 = vector.load %arg2[%c0_8, %c0_9] : memref<16x32xbf16, #tpu.memory_space<vmem>>, vector<16x32xbf16>
      %c0_10 = arith.constant 0 : index
      %c0_11 = arith.constant 0 : index
      %11 = vector.load %arg3[%c0_10, %c0_11] : memref<32x128xbf16, #tpu.memory_space<vmem>>, vector<32x128xbf16>
      %cst_12 = arith.constant dense<0.000000e+00> : vector<16x128xf32>
      %12 = tpu.matmul %10, %11, %cst_12 {dimension_numbers = #tpu.dot_dimension_numbers<[1], [0], [0], [1], [0, 0, 1, 1], [], []>} : vector<16x32xbf16>, vector<32x128xbf16>, vector<16x128xf32> -> vector<16x128xf32>
      %c0_13 = arith.constant 0 : index
      %c0_14 = arith.constant 0 : index
      %13 = vector.load %arg4[%c0_13, %c0_14] : memref<1x128xf32, #tpu.memory_space<vmem>>, vector<1x128xf32>
      %14 = vector.broadcast %13 : vector<1x128xf32> to vector<16x128xf32>
      %15 = arith.addf %12, %14 : vector<16x128xf32>
      %cst_15 = arith.constant 0.000000e+00 : f32
      %16 = vector.broadcast %cst_15 : f32 to vector<16x128xf32>
      %17 = arith.maximumf %15, %16 : vector<16x128xf32>
      %cst_16 = arith.constant dense<0.000000e+00> : vector<16xf32>
      %18 = vector.multi_reduction <add>, %17, %cst_16 [1] : vector<16x128xf32> to vector<16xf32>
      %19 = vector.shape_cast %18 : vector<16xf32> to vector<16x1xf32>
      %20 = arith.mulf %17, %17 : vector<16x128xf32>
      %cst_17 = arith.constant dense<0.000000e+00> : vector<16xf32>
      %21 = vector.multi_reduction <add>, %20, %cst_17 [1] : vector<16x128xf32> to vector<16xf32>
      %22 = vector.shape_cast %21 : vector<16xf32> to vector<16x1xf32>
      %cst_18 = arith.constant 7.812500e-03 : f32
      %23 = vector.broadcast %cst_18 : f32 to vector<16x1xf32>
      %24 = arith.mulf %19, %23 : vector<16x1xf32>
      %cst_19 = arith.constant 7.812500e-03 : f32
      %25 = vector.broadcast %cst_19 : f32 to vector<16x1xf32>
      %26 = arith.mulf %22, %25 : vector<16x1xf32>
      %27 = arith.mulf %24, %24 : vector<16x1xf32>
      %28 = arith.subf %26, %27 : vector<16x1xf32>
      %29 = vector.broadcast %24 : vector<16x1xf32> to vector<16x128xf32>
      %30 = arith.subf %17, %29 : vector<16x128xf32>
      %cst_20 = arith.constant 9.99999974E-6 : f32
      %31 = vector.broadcast %cst_20 : f32 to vector<16x1xf32>
      %32 = arith.addf %28, %31 : vector<16x1xf32>
      %33 = math.rsqrt %32 : vector<16x1xf32>
      %34 = vector.broadcast %33 : vector<16x1xf32> to vector<16x128xf32>
      %35 = arith.mulf %30, %34 : vector<16x128xf32>
      %c0_21 = arith.constant 0 : index
      %c0_22 = arith.constant 0 : index
      %36 = vector.load %arg5[%c0_21, %c0_22] : memref<1x128xf32, #tpu.memory_space<vmem>>, vector<1x128xf32>
      %37 = vector.broadcast %36 : vector<1x128xf32> to vector<16x128xf32>
      %38 = arith.mulf %35, %37 : vector<16x128xf32>
      %c0_23 = arith.constant 0 : index
      %c0_24 = arith.constant 0 : index
      %39 = vector.load %arg6[%c0_23, %c0_24] : memref<1x128xf32, #tpu.memory_space<vmem>>, vector<1x128xf32>
      %40 = vector.broadcast %39 : vector<1x128xf32> to vector<16x128xf32>
      %41 = arith.addf %38, %40 : vector<16x128xf32>
      %42 = arith.truncf %41 : vector<16x128xf32> to vector<16x128xbf16>
      %c0_25 = arith.constant 0 : index
      %c0_26 = arith.constant 0 : index
      %43 = vector.load %arg10[%c0_25, %c0_26] : memref<16x128xbf16, #tpu.memory_space<vmem>>, vector<16x128xbf16>
      tpu.vector_store %arg10[%c0_25, %c0_26], %42 {strides = array<i32>} : memref<16x128xbf16, #tpu.memory_space<vmem>>, vector<16x128xbf16>,
    } else {
    }
    %c0 = arith.constant 0 : index
    %c0_1 = arith.constant 0 : index
    %3 = vector.load %arg10[%c0, %c0_1] : memref<16x128xbf16, #tpu.memory_space<vmem>>, vector<16x128xbf16>
    %c0_2 = arith.constant 0 : index
    %c0_3 = arith.constant 0 : index
    %4 = vector.load %arg7[%c0_2, %c0_3] : memref<128x128xbf16, #tpu.memory_space<vmem>>, vector<128x128xbf16>
    %cst = arith.constant dense<0.000000e+00> : vector<16x128xf32>
    %5 = tpu.matmul %3, %4, %cst {dimension_numbers = #tpu.dot_dimension_numbers<[1], [0], [0], [1], [0, 0, 1, 1], [], []>} : vector<16x128xbf16>, vector<128x128xbf16>, vector<16x128xf32> -> vector<16x128xf32>
    %c0_4 = arith.constant 0 : index
    %c0_5 = arith.constant 0 : index
    %6 = vector.load %arg8[%c0_4, %c0_5] : memref<1x128xf32, #tpu.memory_space<vmem>>, vector<1x128xf32>
    %7 = vector.broadcast %6 : vector<1x128xf32> to vector<16x128xf32>
    %8 = arith.addf %5, %7 : vector<16x128xf32>
    %c0_6 = arith.constant 0 : index
    %c0_7 = arith.constant 0 : index
    %9 = vector.load %arg9[%c0_6, %c0_7] : memref<16x128xf32, #tpu.memory_space<vmem>>, vector<16x128xf32>
    tpu.vector_store %arg9[%c0_6, %c0_7], %8 {strides = array<i32>} : memref<16x128xf32, #tpu.memory_space<vmem>>, vector<16x128xf32>,
    return
  }
  func.func @transform_0(%arg0: i32, %arg1: i32) -> (i32, i32) {
    %c0_i32 = arith.constant 0 : i32
    %c0_i32_0 = arith.constant 0 : i32
    return %arg0, %c0_i32 : i32, i32
  }
  func.func @transform_1(%arg0: i32, %arg1: i32) -> (i32, i32) {
    %c0_i32 = arith.constant 0 : i32
    %c0_i32_0 = arith.constant 0 : i32
    %c0_i32_1 = arith.constant 0 : i32
    return %c0_i32, %c0_i32_0 : i32, i32
  }
  func.func @transform_2(%arg0: i32, %arg1: i32) -> (i32, i32) {
    %c0_i32 = arith.constant 0 : i32
    %c0_i32_0 = arith.constant 0 : i32
    %c0_i32_1 = arith.constant 0 : i32
    return %c0_i32, %c0_i32_0 : i32, i32
  }
  func.func @transform_3(%arg0: i32, %arg1: i32) -> (i32, i32) {
    %c0_i32 = arith.constant 0 : i32
    %c0_i32_0 = arith.constant 0 : i32
    %c0_i32_1 = arith.constant 0 : i32
    return %c0_i32, %c0_i32_0 : i32, i32
  }
  func.func @transform_4(%arg0: i32, %arg1: i32) -> (i32, i32) {
    %c0_i32 = arith.constant 0 : i32
    %c0_i32_0 = arith.constant 0 : i32
    %c0_i32_1 = arith.constant 0 : i32
    return %c0_i32, %c0_i32_0 : i32, i32
  }
  func.func @transform_5(%arg0: i32, %arg1: i32) -> (i32, i32) {
    %c0_i32 = arith.constant 0 : i32
    %c0_i32_0 = arith.constant 0 : i32
    return %c0_i32, %arg1 : i32, i32
  }
  func.func @transform_6(%arg0: i32, %arg1: i32) -> (i32, i32) {
    %c0_i32 = arith.constant 0 : i32
    %c0_i32_0 = arith.constant 0 : i32
    return %c0_i32, %arg1 : i32, i32
  }
  func.func @transform_7(%arg0: i32, %arg1: i32) -> (i32, i32) {
    %c0_i32 = arith.constant 0 : i32
    return %arg0, %arg1 : i32, i32
  }
}

</mosaic_0001>

<bundles_post_ra>
// kernel: tpu_custom_call.1
= control target key start
LH: loop header
LB: loop body
LE: loop exit
PB: predicated region body
PF: predicated region fallthrough
CT: control target
= control target key end

     0   :  { %12 = vsyncpa [#allocation4], 0  ;;  %s630_s0 = inlined_call_operand.hbm [shape: bf16[16,32], index: 0, kind: input, shape index: {}]   ;;  %s631_s1 = inlined_call_operand.hbm [shape: bf16[32,128], index: 1, kind: input, shape index: {}]   ;;  %s632_s2 = inlined_call_operand.vmem [shape: f32[1,128], index: 2, kind: input, shape index: {}]   ;;  %s633_s3 = inlined_call_operand.vmem [shape: f32[1,128], index: 3, kind: input, shape index: {}]   ;;  %s634_s4 = inlined_call_operand.vmem [shape: f32[1,128], index: 4, kind: input, shape index: {}]   ;;  %s635_s5 = inlined_call_operand.hbm [shape: bf16[128,128], index: 5, kind: input, shape index: {}]   ;;  %s636_s6 = inlined_call_operand.vmem [shape: f32[1,128], index: 6, kind: input, shape index: {}]   ;;  %s637_s7 = inlined_call_operand.hbm [shape: f32[16,128], index: 7, kind: output, shape index: {}]  }
   0x1   :  { %13 = vsyncpa [#allocation7], 0 }
   0x2   :  { %14 = vsyncpa [#allocation5], 0  ;;  %s504_s24 = smov [#allocation6]   ;;  %s505_s26 = smov [#allocation3]  }
   0x3   :  { %s32_s25 = sshll.u32 %s504_s24, 4  ;;  %s20_s27 = sshll.u32 %s505_s26, 4  ;;  %s33_s25 = int_to_ptr.vmem [resolvable:$true] %s32_s25  ;;  %s554_s27 = int_to_ptr.vmem [resolvable:$true] %s20_s27 }
   0x4   :  { %s410_s30 = scalar_lea.hbm %s631_s1, 256 }
   0x5   :  { %p411_p0 = scmp.ne.s32.totalorder %s631_s1, %s410_s30  ;;  %p414_p1 = scmp.lt.u32.totalorder %s410_s30, %s631_s1 }
   0x7   :  { %p416_p2 = pnand %p414_p1, %p411_p0 }
   0x9   :  { %419 = shalt.err (!%p416_p2)
}
   0xa   :  { %s420_s12 = scalar_lea.vmem %s33_s25, 256  ;;  %p425_p4 = scmp.lt.s32.totalorder %s33_s25, %s33_s25 }
   0xb   :  { %p421_p3 = scmp.ne.s32.totalorder %s33_s25, %s420_s12  ;;  %p426_p5 = scmp.lt.s32.totalorder %s420_s12, %s420_s12 }
   0xd   :  { %p427_p6 = por %p426_p5, %p425_p4 }
   0xf   :  { %p428_p7 = pnand %p427_p6, %p421_p3 }
  0x11   :  { %431 = shalt.err (!%p428_p7)
}
  0x12   :  { %s506_s13 = smov 64   ;;  %s507_s14 = smov 4  }
  0x13   :  { %38 = dma.hbm_to_vmem [thread:$0]  %s631_s1, 256, %s33_s25, [#allocation7], %s506_s13, %s506_s13, %s507_s14  }
  0x14   :  { %s432_s19 = scalar_lea.hbm %s630_s0, 128 }
  0x15   :  { %p433_p8 = scmp.ne.s32.totalorder %s630_s0, %s432_s19  ;;  %p436_p9 = scmp.lt.u32.totalorder %s432_s19, %s630_s0 }
  0x17   :  { %p438_p10 = pnand %p436_p9, %p433_p8 }
  0x19   :  { %441 = shalt.err (!%p438_p10)
}
  0x1a   :  { %s442_s24 = scalar_lea.vmem %s554_s27, 128  ;;  %p447_p12 = scmp.lt.s32.totalorder %s554_s27, %s554_s27 }
  0x1b   :  { %p443_p11 = scmp.ne.s32.totalorder %s554_s27, %s442_s24  ;;  %p448_p13 = scmp.lt.s32.totalorder %s442_s24, %s442_s24 }
  0x1d   :  { %p449_p0 = por %p448_p13, %p447_p12 }
  0x1f   :  { %p450_p1 = pnand %p449_p0, %p443_p11 }
  0x21   :  { %453 = shalt.err (!%p450_p1)
}
  0x22   :  { %26 = dma.hbm_to_vmem [thread:$0]  %s630_s0, 128, %s554_s27, [#allocation4], %s506_s13, %s506_s13, %s507_s14  }
  0x23   :  { %s508_s26 = smov [#allocation8]   ;;  %s454_s8 = scalar_lea.hbm %s635_s5, 1024 }
  0x24   :  { %s50_s28 = sshll.u32 %s508_s26, 4  ;;  %p455_p2 = scmp.ne.s32.totalorder %s635_s5, %s454_s8  ;;  %s51_s28 = int_to_ptr.vmem [resolvable:$true] %s50_s28 }
  0x25   :  { %p458_p3 = scmp.lt.u32.totalorder %s454_s8, %s635_s5 }
  0x27   :  { %p460_p4 = pnand %p458_p3, %p455_p2 }
  0x29   :  { %463 = shalt.err (!%p460_p4)
}
  0x2a   :  { %s464_s15 = scalar_lea.vmem %s51_s28, 1024  ;;  %p469_p6 = scmp.lt.s32.totalorder %s51_s28, %s51_s28 }
  0x2b   :  { %p465_p5 = scmp.ne.s32.totalorder %s51_s28, %s464_s15  ;;  %p470_p7 = scmp.lt.s32.totalorder %s464_s15, %s464_s15 }
  0x2d   :  { %p471_p8 = por %p470_p7, %p469_p6 }
  0x2f   :  { %p472_p9 = pnand %p471_p8, %p465_p5 }
  0x31   :  { %475 = shalt.err (!%p472_p9)
}
  0x32   :  { %56 = dma.hbm_to_vmem [thread:$0]  %s635_s5, 1024, %s51_s28, [#allocation7], %s506_s13, %s506_s13, %s507_s14  }
  0x33   :  { %498 = dma.done.wait [#allocation4], 128  }
  0x34   :  { %499 = vsyncadd [#allocation4], 4294967168 }
  0x35   :  { %500 = dma.done.wait [#allocation7], 1280  }
  0x36   :  { %501 = vsyncadd [#allocation7], 4294966016  ;;  %v509_v0 = vmov 0.0   ;;  %vm510_vm0 = vmmov 0   ;;  %v395_v1 = vld [vmem:[#allocation6] sm:$0xff]   ;;  %v396_v2 = vld [vmem:[#allocation6 + $0x8] sm:$0xff]  }
  0x37   :  { %357 = vmatprep.subr.bf16.mxu0 %v509_v0  ;;  %361 = vmatprep.mubr.msk.bf16.mxu0 %vm510_vm0, %v509_v0  ;;  %v397_v3 = vld [vmem:[#allocation3] sm:$0xff]   ;;  %vm103_vm1 = vcmask 261120   ;;  %v398_v15 = vld [vmem:[#allocation8] sm:$0xff]   ;;  %v400_v17 = vld [vmem:[#allocation8 + $0x10] sm:$0xff]   ;;  %s511_s20 = smov [#allocation9]  }
  0x38   :  { %365 = vmatprep.subr.bf16.mxu1 %v509_v0  ;;  %381 = vmatprep.mubr.msk.bf16.mxu1 %vm510_vm0, %v509_v0  ;;  %v329_v4 = vld [vmem:[%s632_s2] ss:$0 sm:$0xff]  ;;  %v401_v18 = vld [vmem:[#allocation8 + $0x18] sm:$0xff]   ;;  %v402_v19 = vld [vmem:[#allocation8 + $0x20] sm:$0xff]   ;;  %s316_s21 = sshll.u32 %s511_s20, 4  ;;  %s317_s21 = int_to_ptr.vmem [resolvable:$true] %s316_s21 }
  0x39   :  { %358 = vmatpush3.bf16.msra.mxu0 %v395_v1  ;;  %366 = vmatpush3.bf16.msra.mxu1 %v398_v15  ;;  %v399_v16 = vld [vmem:[#allocation8 + $0x8] sm:$0xff]   ;;  %v404_v21 = vld [vmem:[#allocation8 + $0x30] sm:$0xff]   ;;  %v405_v22 = vld [vmem:[#allocation8 + $0x38] sm:$0xff]   ;;  %p481_p11 = scmp.lt.s32.totalorder %s317_s21, %s317_s21 }
  0x3a   :  { %359 = vmatprep.subr.bf16.mxu0 %v509_v0  ;;  %367 = vmatprep.subr.bf16.mxu1 %v509_v0  ;;  %v403_v20 = vld [vmem:[#allocation8 + $0x28] sm:$0xff]  }
  0x3b   :  { %v334_v40 = vld [vmem:[%s633_s3] ss:$0 sm:$0xff]  ;;  %s476_s3 = scalar_lea.vmem %s317_s21, 256 }
  0x3c   :  { %v335_v45 = vld [vmem:[%s634_s4] ss:$0 sm:$0xff]  ;;  %p477_p10 = scmp.ne.s32.totalorder %s317_s21, %s476_s3  ;;  %p482_p12 = scmp.lt.s32.totalorder %s476_s3, %s476_s3 }
  0x3d   :  { %360 = vmatpush3.bf16.msra.mxu0 %v396_v2  ;;  %368 = vmatpush3.bf16.msra.mxu1 %v399_v16  ;;  %v336_v50 = vld [vmem:[%s636_s6] ss:$0 sm:$0xff] }
  0x3e   :  { %369 = vmatprep.subr.bf16.mxu1 %v509_v0  ;;  %p483_p13 = por %p482_p12, %p481_p11 }
  0x40   :  { %362 = vmatmul.mubr.msk.bf16.vlgmr.msra.gmra.mrb[0].mxu0 %vm103_vm1, %v397_v3  ;;  %p484_p0 = pnand %p483_p13, %p477_p10 }
  0x41   :  { %370 = vmatpush3.bf16.msra.mxu1 %v400_v17 }
  0x42   :  { %371 = vmatprep.subr.bf16.mxu1 %v509_v0 }
  0x45   :  { %372 = vmatpush3.bf16.msra.mxu1 %v401_v18 }
  0x46   :  { %373 = vmatprep.subr.bf16.mxu1 %v509_v0 }
  0x49   :  { %374 = vmatpush3.bf16.msra.mxu1 %v402_v19 }
  0x4a   :  { %375 = vmatprep.subr.bf16.mxu1 %v509_v0 }
  0x4d   :  { %376 = vmatpush3.bf16.msra.mxu1 %v403_v20 }
  0x4e   :  { %377 = vmatprep.subr.bf16.mxu1 %v509_v0 }
  0x51   :  { %378 = vmatpush3.bf16.msra.mxu1 %v404_v21 }
  0x52   :  { %379 = vmatprep.subr.bf16.mxu1 %v509_v0 }
  0x55   :  { %380 = vmatpush3.bf16.msra.mxu1 %v405_v22 }
 0x113   :  { %v141_v5 = vpop.f32.mrb[0].mxu0 }
 0x114   :  { %v142_v6 = vadd.f32 %v329_v4, %v141_v5  ;;  %v363_v7 = vpop.f32.mrb[1].mxu0 }
 0x115   :  { %v144_v8 = vpop.f32.mrb[2].mxu0 }
 0x116   :  { %v148_v9 = vmax.f32 %v142_v6, 0.0  ;;  %v145_v10 = vadd.f32 %v329_v4, %v144_v8  ;;  %v364_v11 = vpop.f32.mrb[3].mxu0 }
 0x118   :  { %v149_v12 = vmax.f32 %v145_v10, 0.0  ;;  %150 = vadd.xlane.f32.xlu0 %v148_v9  ;;  %v154_v13 = vmul.f32 %v148_v9, %v148_v9 }
 0x11a   :  { %156 = vadd.xlane.f32.xlu1 %v154_v13  ;;  %v155_v14 = vmul.f32 %v149_v12, %v149_v12 }
 0x11c   :  { %152 = vadd.xlane.f32.xlu0 %v149_v12 }
 0x11e   :  { %158 = vadd.xlane.f32.xlu1 %v155_v14 }
 0x1a5   :  { %v151_v23 = vpop.xlane.xlu0 %150 }
 0x1a6   :  { %v160_v24 = vmul.f32 0.0078125, %v151_v23 }
 0x1a7   :  { %v157_v25 = vpop.xlane.xlu1 %156 }
 0x1a8   :  { %v164_v26 = vmul.f32 %v160_v24, %v160_v24  ;;  %v162_v27 = vmul.f32 0.0078125, %v157_v25  ;;  %v168_v37 = vsub.f32 %v148_v9, %v160_v24 }
 0x1a9   :  { %v153_v28 = vpop.xlane.xlu0 %152 }
 0x1aa   :  { %v166_v29 = vsub.f32 %v162_v27, %v164_v26  ;;  %v161_v30 = vmul.f32 0.0078125, %v153_v28 }
 0x1ab   :  { %v159_v31 = vpop.xlane.xlu1 %158 }
 0x1ac   :  { %v170_v32 = vadd.f32 1e-05, %v166_v29  ;;  %v165_v33 = vmul.f32 %v161_v30, %v161_v30  ;;  %v163_v34 = vmul.f32 0.0078125, %v159_v31  ;;  %v169_v41 = vsub.f32 %v149_v12, %v161_v30 }
 0x1ae   :  { %406 = vrsqrt.f32 %v170_v32  ;;  %v167_v35 = vsub.f32 %v163_v34, %v165_v33 }
 0x1b0   :  { %v171_v36 = vadd.f32 1e-05, %v167_v35 }
 0x1b2   :  { %408 = vrsqrt.f32 %v171_v36 }
 0x1b8   :  { %v407_v38 = vpop.eup %406 }
 0x1b9   :  { %v174_v39 = vmul.f32 %v407_v38, %v168_v37 }
 0x1bb   :  { %v183_v44 = vmul.f32 %v334_v40, %v174_v39 }
 0x1bc   :  { %v409_v42 = vpop.eup %408 }
 0x1bd   :  { %v175_v43 = vmul.f32 %v409_v42, %v169_v41  ;;  %v192_v47 = vadd.f32 %v335_v45, %v183_v44 }
 0x1bf   :  { %v184_v46 = vmul.f32 %v334_v40, %v175_v43 }
 0x1c1   :  { %v193_v48 = vadd.f32 %v335_v45, %v184_v46 }
 0x1c3   :  { %v194_v49 = vpack.c.bf16 %v193_v48, %v192_v47 }
 0x1c5   :  { %382 = vmatmul.mubr.bf16.vlgmr.msra.gmra.mrb[0].mxu1 %v194_v49 }
 0x298   :  { %v302_v51 = vpop.f32.mrb[0].mxu1 }
 0x299   :  { %v303_v52 = vadd.f32 %v336_v50, %v302_v51  ;;  %v383_v53 = vpop.f32.mrb[1].mxu1 }
 0x29a   :  { %v305_v54 = vpop.f32.mrb[2].mxu1 }
 0x29b   :  { %309 = vst [vmem:[#allocation9] sm:$0xff] %v303_v52  ;;  %v306_v55 = vadd.f32 %v336_v50, %v305_v54  ;;  %v384_v56 = vpop.f32.mrb[3].mxu1 }
 0x29d   :  { %310 = vst [vmem:[#allocation9 + $0x8] sm:$0xff] %v306_v55 }
 0x29e   :  { %487 = shalt.err (!%p484_p0)
}
 0x29f   :  { %s488_s22 = scalar_lea.hbm %s637_s7, 256 }
 0x2a0   :  { %p489_p1 = scmp.ne.s32.totalorder %s637_s7, %s488_s22  ;;  %p492_p2 = scmp.lt.u32.totalorder %s488_s22, %s637_s7 }
 0x2a2   :  { %p494_p3 = pnand %p492_p2, %p489_p1 }
 0x2a4   :  { %497 = shalt.err (!%p494_p3)
}
 0x2a5   :  { %s512_s26 = smov 128   ;;  %s513_s28 = smov 8  }
 0x2a6   :  { %322 = dma.vmem_to_hbm [thread:$0]  %s317_s21, 256, %s637_s7, [#allocation5], %s512_s26, %s512_s26, %s513_s28  }
 0x2a7   :  { %502 = dma.done.wait [#allocation5], 256  }
 0x2a8   :  { %503 = vsyncadd [#allocation5], 4294967040 }
 0x2a9   :  { %326 = vsyncpa [#allocation4], 1 }
 0x2aa   :  { %327 = vsyncpa [#allocation7], 1 }
 0x2ab   :  { %328 = vsyncpa [#allocation5], 1 }

</bundles_post_ra>
